<compile_context>
chip_gen: v6e
topology: v6e:2x2x1
jax: 0.10.0
libtpu: 0.0.40
codegen_flags: <defaults>
</compile_context>

<pallas_src>
import jax
import jax.numpy as jnp
import numpy as np
from jax.experimental import pallas as pl
from jax.experimental.pallas import tpu as pltpu

_SQRT_HALF = 0.7071067811865476


# ---------------------------------------------------------------------------
# Kernel 1: dense -> GELU(erf) -> LayerNorm, per row tile.  1-D grid.
# ---------------------------------------------------------------------------
def _dense_gelu_ln_kernel(x_ref, wd_ref, bd_ref, g_ref, b_ref, hn_ref):
    # x: (tile_m, E) bf16; wd: (E, E) bf16 in (in, out) layout;
    # bd/g/b: (1, E) f32; hn_ref: (tile_m, E) bf16.
    h = jnp.dot(x_ref[...], wd_ref[...], preferred_element_type=jnp.float32)
    h = h + bd_ref[...]

    # Exact erf GELU (matches PyTorch F.gelu default).
    h = 0.5 * h * (1.0 + jax.lax.erf(h * _SQRT_HALF))

    # Single-pass LayerNorm statistics (sum / sum-of-squares), f32, eps=1e-5.
    inv_e = jnp.float32(1.0 / h.shape[-1])
    s1 = jnp.sum(h, axis=-1, keepdims=True)
    s2 = jnp.sum(h * h, axis=-1, keepdims=True)
    mu = s1 * inv_e
    var = jnp.maximum(s2 * inv_e - mu * mu, 0.0)
    hn = (h - mu) * jax.lax.rsqrt(var + 1e-5)
    hn_ref[...] = (hn * g_ref[...] + b_ref[...]).astype(hn_ref.dtype)


# ---------------------------------------------------------------------------
# Kernel 2: vocab projection.  Grid = (vocab tiles OUTER, row tiles INNER).
# The weight block index map depends only on the outer index -> each (E,
# tile_n) weight block is read from HBM exactly once per call.
# ---------------------------------------------------------------------------
def _vocab_proj_kernel(hn_ref, wo_ref, bo_ref, o_ref):
    # hn: (tile_m, E) bf16; wo: (E, tile_n) bf16; bo: (1, tile_n) f32.
    acc = jnp.dot(hn_ref[...], wo_ref[...], preferred_element_type=jnp.float32)
    o_ref[...] = (acc + bo_ref[...]).astype(o_ref.dtype)


# ---------------------------------------------------------------------------
# Wrapper.
# ---------------------------------------------------------------------------
def _round_up(x, m):
    return (x + m - 1) // m * m


def _vmem_limit(needed_bytes):
    """Needed bytes + 25% headroom, floored at 32 MiB, capped at 7/8 physical."""
    try:
        phys = pltpu.get_tpu_info().vmem_capacity_bytes
    except Exception:
        phys = 64 * 1024 * 1024  # conservative fallback (v7x per-TC VMEM)
    want = max(needed_bytes * 5 // 4, 32 * 1024 * 1024)
    return int(min(want, phys * 7 // 8))


def mask_lm_head(features, params, masked_tokens=None, *,
                 tile_m=256, tile_n=512,
                 compute_dtype=jnp.bfloat16, logits_dtype=None):
    """MaskLMHead forward.

    `params` follow the PyTorch module conventions:
      dense_w : (E, E)  nn.Linear(embed, embed).weight      -> (out, in)
      dense_b : (E,)
      ln_g    : (E,)    LayerNorm weight
      ln_b    : (E,)    LayerNorm bias
      out_w   : (V, E)  nn.Linear(embed, vocab, bias=False).weight
      out_b   : (V,)    self.bias
    Returns logits [..., V] in `logits_dtype` (default: features.dtype; pass
    jnp.bfloat16 to halve the dominant logits writeback if the loss allows it).
    """
    if masked_tokens is not None:
        # TODO(synk): a boolean mask gives a dynamic shape and will not compile
        # under jit; pass padded integer indices with a static count instead.
        features = features[masked_tokens]

    E = params["dense_b"].shape[0]
    V = params["out_b"].shape[0]
    out_dtype = features.dtype if logits_dtype is None else logits_dtype

    lead = features.shape[:-1]
    x = features.reshape(-1, E).astype(compute_dtype)
    n = x.shape[0]

    # Clamp tiles to the (aligned) problem size; keep (8, 128) alignment.
    tile_m = min(tile_m, _round_up(max(n, 1), 8))
    tile_n = min(tile_n, _round_up(V, 128))

    n_rows = _round_up(max(n, 1), tile_m)
    if n_rows != n:
        x = jnp.pad(x, ((0, n_rows - n), (0, 0)))
    v_cols = _round_up(V, tile_n)

    # One-time HBM relayouts (ideally hoisted to parameter-load time):
    #   dense_w (out, in) -> (in, out)  so the kernel computes x @ Wd directly,
    #   out_w   (V, E)    -> (E, V)     so the vocab matmul is MXU-native (K,N)
    #                                   with no per-tile relayout.
    wd = jnp.transpose(params["dense_w"]).astype(compute_dtype)
    wo = jnp.transpose(params["out_w"]).astype(compute_dtype)
    bo = params["out_b"]
    if v_cols != V:
        wo = jnp.pad(wo, ((0, 0), (0, v_cols - V)))
        bo = jnp.pad(bo, ((0, v_cols - V),))

    bd2 = params["dense_b"].astype(jnp.float32).reshape(1, E)
    g2 = params["ln_g"].astype(jnp.float32).reshape(1, E)
    b2 = params["ln_b"].astype(jnp.float32).reshape(1, E)
    bo2 = bo.astype(jnp.float32).reshape(1, v_cols)

    isz = jnp.dtype(compute_dtype).itemsize
    osz = jnp.dtype(out_dtype).itemsize

    # ---------------- Kernel 1: hn = LN(gelu(x @ Wd + bd)) * g + b ----------
    k1_vmem = (2 * tile_m * E * isz          # x (double-buffered)
               + 2 * E * E * isz             # Wd (constant index map)
               + 3 * 2 * E * 4               # bd / gamma / beta (f32)
               + 2 * tile_m * E * isz)       # hn output
    hn = pl.pallas_call(
        _dense_gelu_ln_kernel,
        out_shape=jax.ShapeDtypeStruct((n_rows, E), compute_dtype),
        grid_spec=pltpu.PrefetchScalarGridSpec(
            num_scalar_prefetch=0,
            grid=(n_rows // tile_m,),
            in_specs=[
                pl.BlockSpec((tile_m, E), lambda i: (i, 0)),   # x row tile
                # TODO(synk): for very large E on v7x, single-buffer Wd
                # (pipeline_mode=pl.Buffered(1)) or tile the contraction dim.
                pl.BlockSpec((E, E), lambda i: (0, 0)),        # dense W (in,out)
                pl.BlockSpec((1, E), lambda i: (0, 0)),        # dense b
                pl.BlockSpec((1, E), lambda i: (0, 0)),        # ln gamma
                pl.BlockSpec((1, E), lambda i: (0, 0)),        # ln beta
            ],
            out_specs=pl.BlockSpec((tile_m, E), lambda i: (i, 0)),
        ),
        compiler_params=pltpu.CompilerParams(
            dimension_semantics=("parallel",),
            vmem_limit_bytes=_vmem_limit(k1_vmem)),
    )(x, wd, bd2, g2, b2)

    # ---------------- Kernel 2: logits = hn @ Wo + bo -----------------------
    k2_vmem = (2 * tile_m * E * isz          # hn row tile
               + 2 * E * tile_n * isz        # Wo vocab tile
               + 2 * tile_n * 4              # bias tile
               + 2 * tile_m * tile_n * osz)  # output tile
    out = pl.pallas_call(
        _vocab_proj_kernel,
        out_shape=jax.ShapeDtypeStruct((n_rows, v_cols), out_dtype),
        grid_spec=pltpu.PrefetchScalarGridSpec(
            num_scalar_prefetch=0,
            # Vocab tiles OUTER / row tiles INNER: wo/bo blocks only change
            # with the outer index -> the (E, V) weight streams from HBM once.
            grid=(v_cols // tile_n, n_rows // tile_m),
            in_specs=[
                pl.BlockSpec((tile_m, E), lambda j, i: (i, 0)),    # hn tile
                pl.BlockSpec((E, tile_n), lambda j, i: (0, j)),    # Wo tile
                pl.BlockSpec((1, tile_n), lambda j, i: (0, j)),    # bias tile
            ],
            out_specs=pl.BlockSpec((tile_m, tile_n), lambda j, i: (i, j)),
        ),
        compiler_params=pltpu.CompilerParams(
            # No carried state on either axis -> both parallel; on v7x both
            # TensorCores are used even when only one row tile is masked.
            dimension_semantics=("parallel", "parallel"),
            vmem_limit_bytes=_vmem_limit(k2_vmem)),
    )(hn, wo, bo2)

    out = out[:n, :V]
    return out.reshape(*lead, V)


# ---------------------------------------------------------------------------
# Pure-JAX reference (PyTorch conventions, exact erf GELU, bf16 matmul
# operands with f32 accumulation — matching the kernel's precision choices).
# ---------------------------------------------------------------------------
def _reference(features, params, compute_dtype=jnp.bfloat16):
    x = features.astype(compute_dtype)
    h = jnp.dot(x, params["dense_w"].astype(compute_dtype).T,
                preferred_element_type=jnp.float32)
    h = h + params["dense_b"].astype(jnp.float32)
    h = 0.5 * h * (1.0 + jax.lax.erf(h * _SQRT_HALF))
    mu = jnp.mean(h, axis=-1, keepdims=True)
    var = jnp.mean((h - mu) ** 2, axis=-1, keepdims=True)
    hn = (h - mu) * jax.lax.rsqrt(var + 1e-5)
    hn = hn * params["ln_g"].astype(jnp.float32) + params["ln_b"].astype(jnp.float32)
    out = jnp.dot(hn.astype(compute_dtype),
                  params["out_w"].astype(compute_dtype).T,
                  preferred_element_type=jnp.float32)
    out = out + params["out_b"].astype(jnp.float32)
    return out.astype(features.dtype)


if __name__ == "__main__":
    # Small shapes: N = B*T = 16 tokens, E = 128, V = 512.
    B, T, E, V = 2, 8, 128, 512

    key = jax.random.PRNGKey(0)
    k0, k1, k2, k3 = jax.random.split(key, 4)

    features = jax.random.normal(k0, (B, T, E), dtype=jnp.float32)

    params = {
        # PyTorch conventions: nn.Linear.weight is (out_features, in_features).
        "dense_w": jax.random.normal(k1, (E, E), dtype=jnp.float32) * 0.05,
        "dense_b": jax.random.normal(k2, (E,), dtype=jnp.float32) * 0.05,
        "ln_g": jnp.ones((E,), dtype=jnp.float32),
        "ln_b": jnp.zeros((E,), dtype=jnp.float32),
        # nn.Linear(embed_dim, output_dim, bias=False).weight -> (V, E).
        "out_w": jax.random.normal(k3, (V, E), dtype=jnp.float32) * 0.05,
        # self.bias = nn.Parameter(torch.zeros(output_dim))
        "out_b": jnp.zeros((V,), dtype=jnp.float32),
    }

    out = mask_lm_head(features, params, masked_tokens=None)
    out = jax.block_until_ready(out)
    assert out.shape == (B, T, V), out.shape

    ref = _reference(features, params)
    np.testing.assert_allclose(np.asarray(out), np.asarray(ref),
                               rtol=5e-3, atol=5e-3)

    print("KERNEL_OK")
</pallas_src>

<mosaic_0001>
module attributes {stable_mosaic.version = 11 : i64} {
  func.func @_dense_gelu_ln_kernel(%arg0: i32, %arg1: memref<16x128xbf16, #tpu.memory_space<vmem>>, %arg2: memref<128x128xbf16, #tpu.memory_space<vmem>>, %arg3: memref<1x128xf32, #tpu.memory_space<vmem>>, %arg4: memref<1x128xf32, #tpu.memory_space<vmem>>, %arg5: memref<1x128xf32, #tpu.memory_space<vmem>>, %arg6: memref<16x128xbf16, #tpu.memory_space<vmem>>) attributes {dimension_semantics = [#tpu.dimension_semantics<parallel>], iteration_bounds = array<i64: 1>, scalar_prefetch = 0 : i64, scratch_operands = 0 : i64, tpu.core_type = #tpu.core_type<tc>, window_params = [{transform_indices = @transform_0, window_bounds = array<i64: 16, 128>}, {pipeline_mode = #tpu.pipeline_mode<synchronous>, transform_indices = @transform_1, window_bounds = array<i64: 128, 128>}, {pipeline_mode = #tpu.pipeline_mode<synchronous>, transform_indices = @transform_2, window_bounds = array<i64: 1, 128>}, {pipeline_mode = #tpu.pipeline_mode<synchronous>, transform_indices = @transform_3, window_bounds = array<i64: 1, 128>}, {pipeline_mode = #tpu.pipeline_mode<synchronous>, transform_indices = @transform_4, window_bounds = array<i64: 1, 128>}, {transform_indices = @transform_5, window_bounds = array<i64: 16, 128>}]} {
    %c0 = arith.constant 0 : index
    %c0_0 = arith.constant 0 : index
    %0 = vector.load %arg1[%c0, %c0_0] : memref<16x128xbf16, #tpu.memory_space<vmem>>, vector<16x128xbf16>
    %c0_1 = arith.constant 0 : index
    %c0_2 = arith.constant 0 : index
    %1 = vector.load %arg2[%c0_1, %c0_2] : memref<128x128xbf16, #tpu.memory_space<vmem>>, vector<128x128xbf16>
    %cst = arith.constant dense<0.000000e+00> : vector<16x128xf32>
    %2 = tpu.matmul %0, %1, %cst {dimension_numbers = #tpu.dot_dimension_numbers<[1], [0], [0], [1], [0, 0, 1, 1], [], []>} : vector<16x128xbf16>, vector<128x128xbf16>, vector<16x128xf32> -> vector<16x128xf32>
    %c0_3 = arith.constant 0 : index
    %c0_4 = arith.constant 0 : index
    %3 = vector.load %arg3[%c0_3, %c0_4] : memref<1x128xf32, #tpu.memory_space<vmem>>, vector<1x128xf32>
    %4 = vector.broadcast %3 : vector<1x128xf32> to vector<16x128xf32>
    %5 = arith.addf %2, %4 : vector<16x128xf32>
    %cst_5 = arith.constant 5.000000e-01 : f32
    %6 = vector.broadcast %cst_5 : f32 to vector<16x128xf32>
    %7 = arith.mulf %6, %5 : vector<16x128xf32>
    %cst_6 = arith.constant 0.707106769 : f32
    %8 = vector.broadcast %cst_6 : f32 to vector<16x128xf32>
    %9 = arith.mulf %5, %8 : vector<16x128xf32>
    %10 = math.erf %9 : vector<16x128xf32>
    %cst_7 = arith.constant 1.000000e+00 : f32
    %11 = vector.broadcast %cst_7 : f32 to vector<16x128xf32>
    %12 = arith.addf %11, %10 : vector<16x128xf32>
    %13 = arith.mulf %7, %12 : vector<16x128xf32>
    %cst_8 = arith.constant dense<0.000000e+00> : vector<16xf32>
    %14 = vector.multi_reduction <add>, %13, %cst_8 [1] : vector<16x128xf32> to vector<16xf32>
    %15 = vector.shape_cast %14 : vector<16xf32> to vector<16x1xf32>
    %16 = arith.mulf %13, %13 : vector<16x128xf32>
    %cst_9 = arith.constant dense<0.000000e+00> : vector<16xf32>
    %17 = vector.multi_reduction <add>, %16, %cst_9 [1] : vector<16x128xf32> to vector<16xf32>
    %18 = vector.shape_cast %17 : vector<16xf32> to vector<16x1xf32>
    %cst_10 = arith.constant 7.812500e-03 : f32
    %19 = vector.broadcast %cst_10 : f32 to vector<16x1xf32>
    %20 = arith.mulf %15, %19 : vector<16x1xf32>
    %cst_11 = arith.constant 7.812500e-03 : f32
    %21 = vector.broadcast %cst_11 : f32 to vector<16x1xf32>
    %22 = arith.mulf %18, %21 : vector<16x1xf32>
    %23 = arith.mulf %20, %20 : vector<16x1xf32>
    %24 = arith.subf %22, %23 : vector<16x1xf32>
    %cst_12 = arith.constant 0.000000e+00 : f32
    %25 = vector.broadcast %cst_12 : f32 to vector<16x1xf32>
    %26 = arith.maximumf %24, %25 : vector<16x1xf32>
    %27 = vector.broadcast %20 : vector<16x1xf32> to vector<16x128xf32>
    %28 = arith.subf %13, %27 : vector<16x128xf32>
    %cst_13 = arith.constant 9.99999974E-6 : f32
    %29 = vector.broadcast %cst_13 : f32 to vector<16x1xf32>
    %30 = arith.addf %26, %29 : vector<16x1xf32>
    %31 = math.rsqrt %30 : vector<16x1xf32>
    %32 = vector.broadcast %31 : vector<16x1xf32> to vector<16x128xf32>
    %33 = arith.mulf %28, %32 : vector<16x128xf32>
    %c0_14 = arith.constant 0 : index
    %c0_15 = arith.constant 0 : index
    %34 = vector.load %arg4[%c0_14, %c0_15] : memref<1x128xf32, #tpu.memory_space<vmem>>, vector<1x128xf32>
    %35 = vector.broadcast %34 : vector<1x128xf32> to vector<16x128xf32>
    %36 = arith.mulf %33, %35 : vector<16x128xf32>
    %c0_16 = arith.constant 0 : index
    %c0_17 = arith.constant 0 : index
    %37 = vector.load %arg5[%c0_16, %c0_17] : memref<1x128xf32, #tpu.memory_space<vmem>>, vector<1x128xf32>
    %38 = vector.broadcast %37 : vector<1x128xf32> to vector<16x128xf32>
    %39 = arith.addf %36, %38 : vector<16x128xf32>
    %40 = arith.truncf %39 : vector<16x128xf32> to vector<16x128xbf16>
    %c0_18 = arith.constant 0 : index
    %c0_19 = arith.constant 0 : index
    %41 = vector.load %arg6[%c0_18, %c0_19] : memref<16x128xbf16, #tpu.memory_space<vmem>>, vector<16x128xbf16>
    tpu.vector_store %arg6[%c0_18, %c0_19], %40 {strides = array<i32>} : memref<16x128xbf16, #tpu.memory_space<vmem>>, vector<16x128xbf16>,
    return
  }
  func.func @transform_0(%arg0: i32) -> (i32, i32) {
    %c0_i32 = arith.constant 0 : i32
    %c0_i32_0 = arith.constant 0 : i32
    return %arg0, %c0_i32 : i32, i32
  }
  func.func @transform_1(%arg0: i32) -> (i32, i32) {
    %c0_i32 = arith.constant 0 : i32
    %c0_i32_0 = arith.constant 0 : i32
    %c0_i32_1 = arith.constant 0 : i32
    return %c0_i32, %c0_i32_0 : i32, i32
  }
  func.func @transform_2(%arg0: i32) -> (i32, i32) {
    %c0_i32 = arith.constant 0 : i32
    %c0_i32_0 = arith.constant 0 : i32
    %c0_i32_1 = arith.constant 0 : i32
    return %c0_i32, %c0_i32_0 : i32, i32
  }
  func.func @transform_3(%arg0: i32) -> (i32, i32) {
    %c0_i32 = arith.constant 0 : i32
    %c0_i32_0 = arith.constant 0 : i32
    %c0_i32_1 = arith.constant 0 : i32
    return %c0_i32, %c0_i32_0 : i32, i32
  }
  func.func @transform_4(%arg0: i32) -> (i32, i32) {
    %c0_i32 = arith.constant 0 : i32
    %c0_i32_0 = arith.constant 0 : i32
    %c0_i32_1 = arith.constant 0 : i32
    return %c0_i32, %c0_i32_0 : i32, i32
  }
  func.func @transform_5(%arg0: i32) -> (i32, i32) {
    %c0_i32 = arith.constant 0 : i32
    %c0_i32_0 = arith.constant 0 : i32
    return %arg0, %c0_i32 : i32, i32
  }
}

</mosaic_0001>

<bundles_post_ra>
// kernel: tpu_custom_call.1
= control target key start
LH: loop header
LB: loop body
LE: loop exit
PB: predicated region body
PF: predicated region fallthrough
CT: control target
= control target key end

     0   :  { %10 = vsyncpa [#allocation3], 0  ;;  %s458_s0 = inlined_call_operand.hbm [shape: bf16[16,128], index: 0, kind: input, shape index: {}]   ;;  %s459_s1 = inlined_call_operand.hbm [shape: bf16[128,128], index: 1, kind: input, shape index: {}]   ;;  %s460_s2 = inlined_call_operand.vmem [shape: f32[1,128], index: 2, kind: input, shape index: {}]   ;;  %s461_s3 = inlined_call_operand.vmem [shape: f32[1,128], index: 3, kind: input, shape index: {}]   ;;  %s462_s4 = inlined_call_operand.vmem [shape: f32[1,128], index: 4, kind: input, shape index: {}]   ;;  %s463_s5 = inlined_call_operand.hbm [shape: bf16[16,128], index: 5, kind: output, shape index: {}]  }
   0x1   :  { %11 = vsyncpa [#allocation6], 0 }
   0x2   :  { %12 = vsyncpa [#allocation4], 0  ;;  %s394_s18 = smov [#allocation2]  }
   0x3   :  { %s18_s19 = sshll.u32 %s394_s18, 4  ;;  %s19_s19 = int_to_ptr.vmem [resolvable:$true] %s18_s19 }
   0x4   :  { %s336_s20 = scalar_lea.vmem %s19_s19, 128  ;;  %p341_p1 = scmp.lt.s32.totalorder %s19_s19, %s19_s19 }
   0x5   :  { %p337_p0 = scmp.ne.s32.totalorder %s19_s19, %s336_s20  ;;  %p342_p2 = scmp.lt.s32.totalorder %s336_s20, %s336_s20 }
   0x7   :  { %p343_p3 = por %p342_p2, %p341_p1 }
   0x9   :  { %p344_p4 = pnand %p343_p3, %p337_p0 }
   0xb   :  { %347 = shalt.err (!%p344_p4)
}
   0xc   :  { %s395_s21 = smov 64   ;;  %s396_s22 = smov 4  }
   0xd   :  { %24 = dma.hbm_to_vmem [thread:$0]  %s458_s0, 128, %s19_s19, [#allocation3], %s395_s21, %s395_s21, %s396_s22  }
   0xe   :  { %s397_s25 = smov [#allocation5]  }
   0xf   :  { %s30_s26 = sshll.u32 %s397_s25, 4  ;;  %s31_s26 = int_to_ptr.vmem [resolvable:$true] %s30_s26 }
  0x10   :  { %s356_s27 = scalar_lea.vmem %s31_s26, 1024  ;;  %p361_p6 = scmp.lt.s32.totalorder %s31_s26, %s31_s26 }
  0x11   :  { %p357_p5 = scmp.ne.s32.totalorder %s31_s26, %s356_s27  ;;  %p362_p7 = scmp.lt.s32.totalorder %s356_s27, %s356_s27 }
  0x13   :  { %p363_p8 = por %p362_p7, %p361_p6 }
  0x15   :  { %p364_p9 = pnand %p363_p8, %p357_p5 }
  0x17   :  { %367 = shalt.err (!%p364_p9)
}
  0x18   :  { %36 = dma.hbm_to_vmem [thread:$0]  %s459_s1, 1024, %s31_s26, [#allocation6], %s395_s21, %s395_s21, %s396_s22  }
  0x19   :  { %388 = dma.done.wait [#allocation3], 128  }
  0x1a   :  { %389 = vsyncadd [#allocation3], 4294967168 }
  0x1b   :  { %390 = dma.done.wait [#allocation6], 1024  }
  0x1c   :  { %391 = vsyncadd [#allocation6], 4294966272  ;;  %v398_v0 = vmov 0.0   ;;  %vm399_vm0 = vmmov 0   ;;  %v311_v1 = vld [vmem:[#allocation5 + $0x38] sm:$0xff]   ;;  %v312_v2 = vld [vmem:[#allocation5 + $0x30] sm:$0xff]  }
  0x1d   :  { %284 = vmatprep.subr.bf16.mxu0 %v398_v0  ;;  %300 = vmatprep.mubr.msk.bf16.mxu0 %vm399_vm0, %v398_v0  ;;  %v313_v3 = vld [vmem:[#allocation5 + $0x28] sm:$0xff]   ;;  %v314_v4 = vld [vmem:[#allocation5 + $0x20] sm:$0xff]   ;;  %v315_v5 = vld [vmem:[#allocation5 + $0x18] sm:$0xff]   ;;  %s400_s8 = smov [#allocation7]  }
  0x1e   :  { %285 = vmatpush3.bf16.msra.mxu0 %v311_v1  ;;  %v316_v6 = vld [vmem:[#allocation5 + $0x10] sm:$0xff]   ;;  %v317_v7 = vld [vmem:[#allocation5 + $0x8] sm:$0xff]   ;;  %v318_v8 = vld [vmem:[#allocation5] sm:$0xff]   ;;  %s241_s9 = sshll.u32 %s400_s8, 4  ;;  %s242_s9 = int_to_ptr.vmem [resolvable:$true] %s241_s9 }
  0x1f   :  { %286 = vmatprep.subr.bf16.mxu0 %v398_v0  ;;  %v319_v9 = vld [vmem:[#allocation2] sm:$0xff]   ;;  %s368_s10 = scalar_lea.vmem %s242_s9, 128  ;;  %p373_p11 = scmp.lt.s32.totalorder %s242_s9, %s242_s9 }
  0x20   :  { %v254_v10 = vld [vmem:[%s460_s2] ss:$0 sm:$0xff]  ;;  %p369_p10 = scmp.ne.s32.totalorder %s242_s9, %s368_s10  ;;  %p374_p12 = scmp.lt.s32.totalorder %s368_s10, %s368_s10 }
  0x21   :  { %v264_v48 = vld [vmem:[%s461_s3] ss:$0 sm:$0xff] }
  0x22   :  { %287 = vmatpush3.bf16.msra.mxu0 %v312_v2  ;;  %v265_v53 = vld [vmem:[%s462_s4] ss:$0 sm:$0xff]  ;;  %p375_p13 = por %p374_p12, %p373_p11 }
  0x23   :  { %288 = vmatprep.subr.bf16.mxu0 %v398_v0 }
  0x24   :  { %p376_p0 = pnand %p375_p13, %p369_p10 }
  0x26   :  { %289 = vmatpush3.bf16.msra.mxu0 %v313_v3 }
  0x27   :  { %290 = vmatprep.subr.bf16.mxu0 %v398_v0 }
  0x2a   :  { %291 = vmatpush3.bf16.msra.mxu0 %v314_v4 }
  0x2b   :  { %292 = vmatprep.subr.bf16.mxu0 %v398_v0 }
  0x2e   :  { %293 = vmatpush3.bf16.msra.mxu0 %v315_v5 }
  0x2f   :  { %294 = vmatprep.subr.bf16.mxu0 %v398_v0 }
  0x32   :  { %295 = vmatpush3.bf16.msra.mxu0 %v316_v6 }
  0x33   :  { %296 = vmatprep.subr.bf16.mxu0 %v398_v0 }
  0x36   :  { %297 = vmatpush3.bf16.msra.mxu0 %v317_v7 }
  0x37   :  { %298 = vmatprep.subr.bf16.mxu0 %v398_v0 }
  0x3a   :  { %299 = vmatpush3.bf16.msra.mxu0 %v318_v8 }
  0x3d   :  { %301 = vmatmul.mubr.bf16.vlgmr.msra.gmra.mxu0 %v319_v9 }
  0xfd   :  { %v163_v11 = vpop.f32.mrf.mxu0 }
  0xfe   :  { %v164_v12 = vadd.f32 %v254_v10, %v163_v11 }
  0xff   :  { %v302_v13 = vpop.f32.mrf.mxu0 }
 0x100   :  { %v172_v14 = vmul.f32 0.70710677, %v164_v12  ;;  %v170_v20 = vmul.f32 0.5, %v164_v12 }
 0x101   :  { %v166_v15 = vpop.f32.mrf.mxu0 }
 0x102   :  { %320 = verf.f32 %v172_v14  ;;  %v167_v16 = vadd.f32 %v254_v10, %v166_v15 }
 0x103   :  { %v303_v17 = vpop.f32.mrf.mxu0 }
 0x104   :  { %v173_v18 = vmul.f32 0.70710677, %v167_v16  ;;  %v171_v24 = vmul.f32 0.5, %v167_v16 }
 0x106   :  { %322 = verf.f32 %v173_v18 }
 0x10f   :  { %v321_v19 = vpop.eup %320 }
 0x110   :  { %v176_v21 = vadd.f32 1.0, %v321_v19 }
 0x112   :  { %v178_v22 = vmul.f32 %v176_v21, %v170_v20 }
 0x113   :  { %v323_v23 = vpop.eup %322 }
 0x114   :  { %180 = vadd.xlane.f32.xlu0 %v178_v22  ;;  %v184_v25 = vmul.f32 %v178_v22, %v178_v22  ;;  %v177_v26 = vadd.f32 1.0, %v323_v23 }
 0x116   :  { %186 = vadd.xlane.f32.xlu1 %v184_v25  ;;  %v179_v27 = vmul.f32 %v177_v26, %v171_v24 }
 0x118   :  { %182 = vadd.xlane.f32.xlu0 %v179_v27  ;;  %v185_v28 = vmul.f32 %v179_v27, %v179_v27 }
 0x11a   :  { %188 = vadd.xlane.f32.xlu1 %v185_v28 }
 0x19d   :  { %v181_v29 = vpop.xlane.xlu0 %180 }
 0x19e   :  { %v190_v30 = vmul.f32 0.0078125, %v181_v29 }
 0x19f   :  { %v187_v31 = vpop.xlane.xlu1 %186 }
 0x1a0   :  { %v194_v32 = vmul.f32 %v190_v30, %v190_v30  ;;  %v192_v33 = vmul.f32 0.0078125, %v187_v31  ;;  %v200_v45 = vsub.f32 %v178_v22, %v190_v30 }
 0x1a1   :  { %v183_v34 = vpop.xlane.xlu0 %182 }
 0x1a2   :  { %v196_v35 = vsub.f32 %v192_v33, %v194_v32  ;;  %v191_v36 = vmul.f32 0.0078125, %v183_v34 }
 0x1a3   :  { %v189_v37 = vpop.xlane.xlu1 %188 }
 0x1a4   :  { %v198_v38 = vmax.f32 %v196_v35, 0.0  ;;  %v195_v39 = vmul.f32 %v191_v36, %v191_v36  ;;  %v193_v40 = vmul.f32 0.0078125, %v189_v37  ;;  %v201_v49 = vsub.f32 %v179_v27, %v191_v36 }
 0x1a6   :  { %v202_v41 = vadd.f32 1e-05, %v198_v38  ;;  %v197_v42 = vsub.f32 %v193_v40, %v195_v39 }
 0x1a8   :  { %324 = vrsqrt.f32 %v202_v41  ;;  %v199_v43 = vmax.f32 %v197_v42, 0.0 }
 0x1aa   :  { %v203_v44 = vadd.f32 1e-05, %v199_v43 }
 0x1ac   :  { %326 = vrsqrt.f32 %v203_v44 }
 0x1b5   :  { %v325_v46 = vpop.eup %324 }
 0x1b6   :  { %v206_v47 = vmul.f32 %v325_v46, %v200_v45 }
 0x1b8   :  { %v215_v52 = vmul.f32 %v264_v48, %v206_v47 }
 0x1b9   :  { %v327_v50 = vpop.eup %326 }
 0x1ba   :  { %v207_v51 = vmul.f32 %v327_v50, %v201_v49  ;;  %v224_v55 = vadd.f32 %v265_v53, %v215_v52 }
 0x1bc   :  { %v216_v54 = vmul.f32 %v264_v48, %v207_v51 }
 0x1be   :  { %v225_v56 = vadd.f32 %v265_v53, %v216_v54 }
 0x1c0   :  { %v273_v57 = vpack.c.bf16 %v225_v56, %v224_v55 }
 0x1c2   :  { %274 = vst [vmem:[#allocation7] sm:$0xff] %v273_v57  }
 0x1c3   :  { %379 = shalt.err (!%p376_p0)
}
 0x1c4   :  { %247 = dma.vmem_to_hbm [thread:$0]  %s242_s9, 128, %s463_s5, [#allocation4], %s395_s21, %s395_s21, %s396_s22  }
 0x1c5   :  { %392 = dma.done.wait [#allocation4], 128  }
 0x1c6   :  { %393 = vsyncadd [#allocation4], 4294967168 }
 0x1c7   :  { %251 = vsyncpa [#allocation3], 1 }
 0x1c8   :  { %252 = vsyncpa [#allocation6], 1 }
 0x1c9   :  { %253 = vsyncpa [#allocation4], 1 }

</bundles_post_ra>
